<compile_context>
chip_gen: v6e
topology: v6e:2x2x1
jax: 0.10.0
libtpu: 0.0.40
codegen_flags: <defaults>
</compile_context>

<pallas_src>
import functools

import jax
import jax.numpy as jnp
from jax.experimental import pallas as pl
from jax.experimental.pallas import tpu as pltpu

EPS = 1e-6


def _round_up(n, m):
    return ((n + m - 1) // m) * m


def _pick_tile_n(n_rows, d, *, vmem_input_budget=12 << 20, max_tile=2048):
    # 3 inputs x 2 pipeline buffers x tile_n x D x 4 B must fit the budget.
    by_vmem = vmem_input_budget // (3 * 2 * d * 4)
    tile = min(max_tile, max(8, by_vmem))
    tile = min(tile, _round_up(n_rows, 8))
    return max(8, (tile // 8) * 8)


def _triplet_logexp_kernel(a_ref, p_ref, n_ref, out_ref, acc_ref, *,
                           total_n, tile_n, tiles_per_block):
    p_idx = pl.program_id(0)   # parallel row-block axis (both TCs on v7x)
    t_idx = pl.program_id(1)   # reduction over tiles inside a row block

    @pl.when(t_idx == 0)
    def _init():
        acc_ref[...] = jnp.zeros_like(acc_ref)

    a = a_ref[...].astype(jnp.float32)
    pos = p_ref[...].astype(jnp.float32)
    neg = n_ref[...].astype(jnp.float32)

    # F.pairwise_distance(x1, x2, p=2, eps) = ||x1 - x2 + eps||_2 along dim=1
    dp = jnp.sqrt(jnp.sum((a - pos + EPS) ** 2, axis=1, keepdims=True))
    dn = jnp.sqrt(jnp.sum((a - neg + EPS) ** 2, axis=1, keepdims=True))

    # Numerically stable softplus(x) == log(1 + exp(x)).
    x = dp - dn
    dist = jnp.maximum(x, 0.0) + jnp.log1p(jnp.exp(-jnp.abs(x)))

    # Mask out rows added by padding N up to the tile grid.
    row_in_tile = jax.lax.broadcasted_iota(jnp.int32, (tile_n, 1), 0)
    global_row = (p_idx * tiles_per_block + t_idx) * tile_n + row_in_tile
    dist = jnp.where(global_row < total_n, dist, 0.0)

    # Per-row partial sums stay in VMEM; no per-step scalar crossing.
    acc_ref[...] += dist

    @pl.when(t_idx == pl.num_programs(1) - 1)
    def _finalize():
        out_ref[0, 0] = jnp.sum(acc_ref[...])


def triplet_logexp_loss(anchor, positive, negative, *, tile_n=None,
                        num_parallel_blocks=2):
    assert anchor.shape == positive.shape == negative.shape, \
        "Input sizes must be equal."
    assert anchor.ndim == 2, "Input must be a 2D matrix."
    N, D = anchor.shape

    if tile_n is None:
        tile_n = _pick_tile_n(N, D)
    tile_n = max(8, (tile_n // 8) * 8)

    num_tiles = -(-N // tile_n)
    P = num_parallel_blocks if num_tiles >= num_parallel_blocks else 1
    tiles_per_block = -(-num_tiles // P)
    n_pad = P * tiles_per_block * tile_n

    def _pad(x):
        if n_pad == N:
            return x
        return jnp.pad(x, ((0, n_pad - N), (0, 0)))

    a_in, p_in, n_in = _pad(anchor), _pad(positive), _pad(negative)

    row_spec = pl.BlockSpec((tile_n, D),
                            lambda p, t: (p * tiles_per_block + t, 0))

    partials = pl.pallas_call(
        functools.partial(_triplet_logexp_kernel, total_n=N, tile_n=tile_n,
                          tiles_per_block=tiles_per_block),
        out_shape=jax.ShapeDtypeStruct((P, 1), jnp.float32),
        grid_spec=pltpu.PrefetchScalarGridSpec(
            num_scalar_prefetch=0,
            grid=(P, tiles_per_block),
            in_specs=[row_spec, row_spec, row_spec],
            out_specs=pl.BlockSpec(
                (1, 1), lambda p, t: (p, 0), memory_space=pltpu.SMEM
            ),
            scratch_shapes=[pltpu.VMEM((tile_n, 1), jnp.float32)],
        ),
        compiler_params=pltpu.CompilerParams(
            dimension_semantics=("parallel", "arbitrary"),
            vmem_limit_bytes=32 * 1024 * 1024,
        ),
    )(a_in, p_in, n_in)

    # Final mean over per-block partial sums (tiny, done in plain JAX).
    return jnp.sum(partials) / jnp.float32(N)


def _reference(anchor, positive, negative):
    a = anchor.astype(jnp.float32)
    p = positive.astype(jnp.float32)
    n = negative.astype(jnp.float32)
    dp = jnp.sqrt(jnp.sum((a - p + EPS) ** 2, axis=1))
    dn = jnp.sqrt(jnp.sum((a - n + EPS) ** 2, axis=1))
    return jnp.mean(jnp.log1p(jnp.exp(dp - dn)))


if __name__ == "__main__":
    key = jax.random.PRNGKey(0)
    k1, k2, k3 = jax.random.split(key, 3)

    # Primary small (N, D) triplet batch.
    N, D = 16, 128
    anchor = jax.random.normal(k1, (N, D), dtype=jnp.float32)
    positive = jax.random.normal(k2, (N, D), dtype=jnp.float32)
    negative = jax.random.normal(k3, (N, D), dtype=jnp.float32)

    loss = jax.block_until_ready(triplet_logexp_loss(anchor, positive, negative))
    ref = _reference(anchor, positive, negative)
    assert jnp.allclose(loss, ref, rtol=1e-5, atol=1e-5), (loss, ref)

    # Ragged N + forced small tile exercises padding/masking and the
    # two-block parallel axis (both TensorCores on v7x).
    N2, D2 = 100, 64
    a2 = jax.random.normal(k1, (N2, D2), dtype=jnp.float32)
    p2 = jax.random.normal(k2, (N2, D2), dtype=jnp.float32)
    n2 = jax.random.normal(k3, (N2, D2), dtype=jnp.float32)
    loss2 = jax.block_until_ready(triplet_logexp_loss(a2, p2, n2, tile_n=16))
    ref2 = _reference(a2, p2, n2)
    assert jnp.allclose(loss2, ref2, rtol=1e-5, atol=1e-5), (loss2, ref2)

    print("KERNEL_OK")
</pallas_src>

<mosaic_0001>
module attributes {stable_mosaic.version = 11 : i64} {
  func.func @_triplet_logexp_kernel(%arg0: i32, %arg1: i32, %arg2: memref<16x128xf32, #tpu.memory_space<vmem>>, %arg3: memref<16x128xf32, #tpu.memory_space<vmem>>, %arg4: memref<16x128xf32, #tpu.memory_space<vmem>>, %arg5: memref<1x1xf32, #tpu.memory_space<smem>>, %arg6: memref<16x1xf32, #tpu.memory_space<vmem>>) attributes {dimension_semantics = [#tpu.dimension_semantics<parallel>, #tpu.dimension_semantics<arbitrary>], iteration_bounds = array<i64: 1, 1>, scalar_prefetch = 0 : i64, scratch_operands = 1 : i64, tpu.core_type = #tpu.core_type<tc>, window_params = [{transform_indices = @transform_0, window_bounds = array<i64: 16, 128>}, {transform_indices = @transform_1, window_bounds = array<i64: 16, 128>}, {transform_indices = @transform_2, window_bounds = array<i64: 16, 128>}, {transform_indices = @transform_3, window_bounds = array<i64: 1, 1>}]} {
    %c0_i32 = arith.constant 0 : i32
    %0 = arith.cmpi eq, %arg1, %c0_i32 : i32
    %1 = arith.extui %0 : i1 to i32
    %c0_i32_0 = arith.constant 0 : i32
    %2 = arith.cmpi ne, %1, %c0_i32_0 : i32
    scf.if %2 {
      %cst_19 = arith.constant 0.000000e+00 : f32
      %45 = vector.broadcast %cst_19 : f32 to vector<16x1xf32>
      %c0_20 = arith.constant 0 : index
      %c0_21 = arith.constant 0 : index
      %46 = vector.load %arg6[%c0_20, %c0_21] : memref<16x1xf32, #tpu.memory_space<vmem>>, vector<16x1xf32>
      tpu.vector_store %arg6[%c0_20, %c0_21], %45 {strides = array<i32>} : memref<16x1xf32, #tpu.memory_space<vmem>>, vector<16x1xf32>,
    } else {
    }
    %c0 = arith.constant 0 : index
    %c0_1 = arith.constant 0 : index
    %3 = vector.load %arg2[%c0, %c0_1] : memref<16x128xf32, #tpu.memory_space<vmem>>, vector<16x128xf32>
    %c0_2 = arith.constant 0 : index
    %c0_3 = arith.constant 0 : index
    %4 = vector.load %arg3[%c0_2, %c0_3] : memref<16x128xf32, #tpu.memory_space<vmem>>, vector<16x128xf32>
    %c0_4 = arith.constant 0 : index
    %c0_5 = arith.constant 0 : index
    %5 = vector.load %arg4[%c0_4, %c0_5] : memref<16x128xf32, #tpu.memory_space<vmem>>, vector<16x128xf32>
    %6 = arith.subf %3, %4 : vector<16x128xf32>
    %cst = arith.constant 9.99999997E-7 : f32
    %7 = vector.broadcast %cst : f32 to vector<16x128xf32>
    %8 = arith.addf %6, %7 : vector<16x128xf32>
    %9 = arith.mulf %8, %8 : vector<16x128xf32>
    %cst_6 = arith.constant dense<0.000000e+00> : vector<16xf32>
    %10 = vector.multi_reduction <add>, %9, %cst_6 [1] : vector<16x128xf32> to vector<16xf32>
    %11 = vector.shape_cast %10 : vector<16xf32> to vector<16x1xf32>
    %12 = math.sqrt %11 : vector<16x1xf32>
    %13 = arith.subf %3, %5 : vector<16x128xf32>
    %cst_7 = arith.constant 9.99999997E-7 : f32
    %14 = vector.broadcast %cst_7 : f32 to vector<16x128xf32>
    %15 = arith.addf %13, %14 : vector<16x128xf32>
    %16 = arith.mulf %15, %15 : vector<16x128xf32>
    %cst_8 = arith.constant dense<0.000000e+00> : vector<16xf32>
    %17 = vector.multi_reduction <add>, %16, %cst_8 [1] : vector<16x128xf32> to vector<16xf32>
    %18 = vector.shape_cast %17 : vector<16xf32> to vector<16x1xf32>
    %19 = math.sqrt %18 : vector<16x1xf32>
    %20 = arith.subf %12, %19 : vector<16x1xf32>
    %cst_9 = arith.constant 0.000000e+00 : f32
    %21 = vector.broadcast %cst_9 : f32 to vector<16x1xf32>
    %22 = arith.maximumf %20, %21 : vector<16x1xf32>
    %23 = math.absf %20 : vector<16x1xf32>
    %cst_10 = arith.constant 0.000000e+00 : f32
    %24 = vector.broadcast %cst_10 : f32 to vector<16x1xf32>
    %25 = arith.subf %24, %23 : vector<16x1xf32>
    %26 = math.exp %25 : vector<16x1xf32>
    %27 = math.log1p %26 : vector<16x1xf32>
    %28 = arith.addf %22, %27 : vector<16x1xf32>
    %29 = tpu.iota {dimensions = array<i32: 0>} : vector<16x1xi32>
    %c1_i32 = arith.constant 1 : i32
    %30 = arith.muli %arg0, %c1_i32 : i32
    %31 = arith.addi %30, %arg1 : i32
    %c16_i32 = arith.constant 16 : i32
    %32 = arith.muli %31, %c16_i32 : i32
    %33 = vector.broadcast %32 : i32 to vector<16x1xi32>
    %34 = arith.addi %33, %29 : vector<16x1xi32>
    %c16_i32_11 = arith.constant 16 : i32
    %35 = vector.broadcast %c16_i32_11 : i32 to vector<16x1xi32>
    %36 = arith.cmpi slt, %34, %35 : vector<16x1xi32>
    %cst_12 = arith.constant 0.000000e+00 : f32
    %37 = vector.broadcast %cst_12 : f32 to vector<16x1xf32>
    %38 = arith.select %36, %28, %37 : vector<16x1xi1>, vector<16x1xf32>
    %c0_13 = arith.constant 0 : index
    %c0_14 = arith.constant 0 : index
    %39 = vector.load %arg6[%c0_13, %c0_14] : memref<16x1xf32, #tpu.memory_space<vmem>>, vector<16x1xf32>
    %40 = arith.addf %39, %38 : vector<16x1xf32>
    %c0_15 = arith.constant 0 : index
    %c0_16 = arith.constant 0 : index
    %41 = vector.load %arg6[%c0_15, %c0_16] : memref<16x1xf32, #tpu.memory_space<vmem>>, vector<16x1xf32>
    tpu.vector_store %arg6[%c0_15, %c0_16], %40 {strides = array<i32>} : memref<16x1xf32, #tpu.memory_space<vmem>>, vector<16x1xf32>,
    %c0_i32_17 = arith.constant 0 : i32
    %42 = arith.cmpi eq, %arg1, %c0_i32_17 : i32
    %43 = arith.extui %42 : i1 to i32
    %c0_i32_18 = arith.constant 0 : i32
    %44 = arith.cmpi ne, %43, %c0_i32_18 : i32
    scf.if %44 {
      %c0_19 = arith.constant 0 : index
      %c0_20 = arith.constant 0 : index
      %45 = vector.load %arg6[%c0_19, %c0_20] : memref<16x1xf32, #tpu.memory_space<vmem>>, vector<16x1xf32>
      %46 = vector.shape_cast %45 : vector<16x1xf32> to vector<1x16x1xf32>
      %cst_21 = arith.constant dense<0.000000e+00> : vector<1xf32>
      %47 = vector.multi_reduction <add>, %46, %cst_21 [1, 2] : vector<1x16x1xf32> to vector<1xf32>
      %48 = vector.shape_cast %47 : vector<1xf32> to vector<1x1x1xf32>
      %49 = vector.extract %48[0, 0, 0] : f32 from vector<1x1x1xf32>
      %c0_22 = arith.constant 0 : index
      %c0_23 = arith.constant 0 : index
      %50 = memref.load %arg5[%c0_22, %c0_23] : memref<1x1xf32, #tpu.memory_space<smem>>
      memref.store %49, %arg5[%c0_22, %c0_23] : memref<1x1xf32, #tpu.memory_space<smem>>
    } else {
    }
    return
  }
  func.func @transform_0(%arg0: i32, %arg1: i32) -> (i32, i32) {
    %c1_i32 = arith.constant 1 : i32
    %0 = arith.muli %arg0, %c1_i32 : i32
    %1 = arith.addi %0, %arg1 : i32
    %c0_i32 = arith.constant 0 : i32
    %c0_i32_0 = arith.constant 0 : i32
    return %1, %c0_i32 : i32, i32
  }
  func.func @transform_1(%arg0: i32, %arg1: i32) -> (i32, i32) {
    %c1_i32 = arith.constant 1 : i32
    %0 = arith.muli %arg0, %c1_i32 : i32
    %1 = arith.addi %0, %arg1 : i32
    %c0_i32 = arith.constant 0 : i32
    %c0_i32_0 = arith.constant 0 : i32
    return %1, %c0_i32 : i32, i32
  }
  func.func @transform_2(%arg0: i32, %arg1: i32) -> (i32, i32) {
    %c1_i32 = arith.constant 1 : i32
    %0 = arith.muli %arg0, %c1_i32 : i32
    %1 = arith.addi %0, %arg1 : i32
    %c0_i32 = arith.constant 0 : i32
    %c0_i32_0 = arith.constant 0 : i32
    return %1, %c0_i32 : i32, i32
  }
  func.func @transform_3(%arg0: i32, %arg1: i32) -> (i32, i32) {
    %c0_i32 = arith.constant 0 : i32
    %c0_i32_0 = arith.constant 0 : i32
    return %arg0, %c0_i32 : i32, i32
  }
}

</mosaic_0001>

<bundles_post_ra>
// kernel: tpu_custom_call.1
= control target key start
LH: loop header
LB: loop body
LE: loop exit
PB: predicated region body
PF: predicated region fallthrough
CT: control target
= control target key end

     0   :  { %8 = vsyncpa [#allocation4], 0  ;;  %s364_s0 = inlined_call_operand.hbm [shape: f32[16,128], index: 0, kind: input, shape index: {}]   ;;  %s365_s1 = inlined_call_operand.hbm [shape: f32[16,128], index: 1, kind: input, shape index: {}]   ;;  %s366_s2 = inlined_call_operand.hbm [shape: f32[16,128], index: 2, kind: input, shape index: {}]   ;;  %s367_s3 = inlined_call_operand.hbm [shape: f32[1,1], index: 3, kind: output, shape index: {}]  }
   0x1   :  { %9 = vsyncpa [#allocation7], 0 }
   0x2   :  { %10 = vsyncpa [#allocation5], 0  ;;  %s319_s12 = smov [#allocation6]   ;;  %s320_s14 = smov [#allocation3]  }
   0x3   :  { %s36_s13 = sshll.u32 %s319_s12, 4  ;;  %s20_s15 = sshll.u32 %s320_s14, 4  ;;  %s37_s13 = int_to_ptr.vmem [resolvable:$true] %s36_s13  ;;  %s21_s15 = int_to_ptr.vmem [resolvable:$true] %s20_s15 }
   0x4   :  { %s253_s16 = scalar_lea.vmem %s37_s13, 256  ;;  %p258_p1 = scmp.lt.s32.totalorder %s37_s13, %s37_s13 }
   0x5   :  { %p254_p0 = scmp.ne.s32.totalorder %s37_s13, %s253_s16  ;;  %p259_p2 = scmp.lt.s32.totalorder %s253_s16, %s253_s16 }
   0x7   :  { %p260_p3 = por %p259_p2, %p258_p1 }
   0x9   :  { %p261_p4 = pnand %p260_p3, %p254_p0 }
   0xb   :  { %264 = shalt.err (!%p261_p4)
}
   0xc   :  { %s321_s17 = smov 128   ;;  %s322_s18 = smov 8  }
   0xd   :  { %42 = dma.hbm_to_vmem [thread:$0]  %s365_s1, 256, %s37_s13, [#allocation7], %s321_s17, %s321_s17, %s322_s18  }
   0xe   :  { %s273_s21 = scalar_lea.vmem %s21_s15, 256  ;;  %p278_p6 = scmp.lt.s32.totalorder %s21_s15, %s21_s15 }
   0xf   :  { %p274_p5 = scmp.ne.s32.totalorder %s21_s15, %s273_s21  ;;  %p279_p7 = scmp.lt.s32.totalorder %s273_s21, %s273_s21 }
  0x11   :  { %p280_p8 = por %p279_p7, %p278_p6 }
  0x13   :  { %p281_p9 = pnand %p280_p8, %p274_p5 }
  0x15   :  { %284 = shalt.err (!%p281_p9)
}
  0x16   :  { %26 = dma.hbm_to_vmem [thread:$0]  %s364_s0, 256, %s21_s15, [#allocation4], %s321_s17, %s321_s17, %s322_s18  }
  0x17   :  { %s323_s24 = smov [#allocation8]  }
  0x18   :  { %s52_s25 = sshll.u32 %s323_s24, 4  ;;  %s53_s25 = int_to_ptr.vmem [resolvable:$true] %s52_s25 }
  0x19   :  { %s293_s26 = scalar_lea.vmem %s53_s25, 256  ;;  %p298_p11 = scmp.lt.s32.totalorder %s53_s25, %s53_s25 }
  0x1a   :  { %p294_p10 = scmp.ne.s32.totalorder %s53_s25, %s293_s26  ;;  %p299_p12 = scmp.lt.s32.totalorder %s293_s26, %s293_s26 }
  0x1c   :  { %p300_p13 = por %p299_p12, %p298_p11 }
  0x1e   :  { %p301_p0 = pnand %p300_p13, %p294_p10 }
  0x20   :  { %304 = shalt.err (!%p301_p0)
}
  0x21   :  { %58 = dma.hbm_to_vmem [thread:$0]  %s366_s2, 256, %s53_s25, [#allocation7], %s321_s17, %s321_s17, %s322_s18  }
  0x22   :  { %313 = dma.done.wait [#allocation4], 256  }
  0x23   :  { %314 = vsyncadd [#allocation4], 4294967040 }
  0x24   :  { %315 = dma.done.wait [#allocation7], 512  }
  0x25   :  { %316 = vsyncadd [#allocation7], 4294966784  ;;  %v81_v0 = vld [vmem:[#allocation3] sm:$0xff]  ;;  %v83_v2 = vld [vmem:[#allocation6] sm:$0xff]  ;;  %vm78_vm0 = vcmask 7168   ;;  %v324_v18 = vmov 0.0  }
  0x26   :  { %v85_v1 = vld [vmem:[#allocation8] sm:$0xff]  ;;  %v87_v4 = vsub.f32 %v81_v0, %v83_v2  ;;  %v82_v5 = vld [vmem:[#allocation3 + $0x8] sm:$0xff]  ;;  %v84_v7 = vld [vmem:[#allocation6 + $0x8] sm:$0xff]  ;;  %79 = vst.msk [vmem:[#allocation2] sm:$0xff] %vm78_vm0, %v324_v18  ;;  %s325_s2 = smov [#allocation9]  }
  0x27   :  { %v111_v3 = vsub.f32 %v81_v0, %v85_v1  ;;  %v86_v6 = vld [vmem:[#allocation8 + $0x8] sm:$0xff]  ;;  %v88_v9 = vsub.f32 %v82_v5, %v84_v7  ;;  %80 = vst.msk [vmem:[#allocation2 + $0x8] sm:$0xff] %vm78_vm0, %v324_v18 }
  0x28   :  { %v112_v8 = vsub.f32 %v82_v5, %v86_v6  ;;  %v89_v11 = vadd.f32 1e-06, %v87_v4 }
  0x29   :  { %v113_v10 = vadd.f32 1e-06, %v111_v3  ;;  %v90_v13 = vadd.f32 1e-06, %v88_v9 }
  0x2a   :  { %v114_v12 = vadd.f32 1e-06, %v112_v8  ;;  %v91_v15 = vmul.f32 %v89_v11, %v89_v11 }
  0x2b   :  { %v115_v14 = vmul.f32 %v113_v10, %v113_v10  ;;  %v92_v17 = vmul.f32 %v90_v13, %v90_v13 }
  0x2c   :  { %93 = vadd.xlane.f32.xlu0 %v91_v15  ;;  %v116_v16 = vmul.f32 %v114_v12, %v114_v12 }
  0x2d   :  { %117 = vadd.xlane.f32.xlu1 %v115_v14  ;;  %v179_v2 = vld [vmem:[#allocation2] sm:$0xff] }
  0x2e   :  { %v180_v10 = vld [vmem:[#allocation2 + $0x8] sm:$0xff] }
  0x30   :  { %95 = vadd.xlane.f32.xlu0 %v92_v17 }
  0x31   :  { %119 = vadd.xlane.f32.xlu1 %v116_v16 }
  0xb5   :  { %v94_v20 = vpop.xlane.xlu0 %93 }
  0xb6   :  { %v118_v19 = vpop.xlane.xlu1 %117  ;;  %vm99_vm3 = vcmp.eq.f32.partialorder %v94_v20, inf  ;;  %v102_v29 = vand.u32 2147483648, %v94_v20  ;;  %vm101_vm4 = vcmp.eq.f32.partialorder %v94_v20, 0.0 }
  0xb7   :  { %229 = vrsqrt.f32 %v118_v19  ;;  %vm123_vm1 = vcmp.eq.f32.partialorder %v118_v19, inf  ;;  %v126_v26 = vand.u32 2147483648, %v118_v19  ;;  %vm125_vm2 = vcmp.eq.f32.partialorder %v118_v19, 0.0 }
  0xb8   :  { %231 = vrsqrt.f32 %v94_v20 }
  0xb9   :  { %v96_v22 = vpop.xlane.xlu0 %95 }
  0xba   :  { %v120_v21 = vpop.xlane.xlu1 %119  ;;  %vm106_vm7 = vcmp.eq.f32.partialorder %v96_v22, inf  ;;  %v109_v40 = vand.u32 2147483648, %v96_v22  ;;  %vm108_vm8 = vcmp.eq.f32.partialorder %v96_v22, 0.0 }
  0xbb   :  { %233 = vrsqrt.f32 %v120_v21  ;;  %vm130_vm5 = vcmp.eq.f32.partialorder %v120_v21, inf  ;;  %v133_v37 = vand.u32 2147483648, %v120_v21  ;;  %vm132_vm6 = vcmp.eq.f32.partialorder %v120_v21, 0.0 }
  0xbc   :  { %235 = vrsqrt.f32 %v96_v22 }
  0xc4   :  { %v230_v23 = vpop.eup %229 }
  0xc5   :  { %v232_v24 = vpop.eup %231  ;;  %v122_v25 = vmul.f32 %v230_v23, %v118_v19 }
  0xc6   :  { %v98_v27 = vmul.f32 %v232_v24, %v94_v20 }
  0xc7   :  { %v124_v28 = vsel %vm123_vm1, %v118_v19, %v122_v25 }
  0xc8   :  { %v234_v30 = vpop.eup %233  ;;  %v127_v31 = vsel %vm125_vm2, %v126_v26, %v124_v28  ;;  %v100_v32 = vsel %vm99_vm3, %v94_v20, %v98_v27 }
  0xc9   :  { %v236_v33 = vpop.eup %235  ;;  %v103_v34 = vsel %vm101_vm4, %v102_v29, %v100_v32  ;;  %v129_v35 = vmul.f32 %v234_v30, %v120_v21 }
  0xca   :  { %v135_v36 = vsub.f32 %v103_v34, %v127_v31  ;;  %v105_v38 = vmul.f32 %v236_v33, %v96_v22 }
  0xcb   :  { %v131_v39 = vsel %vm130_vm5, %v120_v21, %v129_v35 }
  0xcc   :  { %v139_v41 = vand.u32 2147483647, %v135_v36  ;;  %v134_v42 = vsel %vm132_vm6, %v133_v37, %v131_v39  ;;  %v107_v43 = vsel %vm106_vm7, %v96_v22, %v105_v38  ;;  %v137_v63 = vmax.f32 %v135_v36, 0.0 }
  0xcd   :  { %v110_v44 = vsel %vm108_vm8, %v109_v40, %v107_v43 }
  0xce   :  { %v141_v45 = vsub.f32 0.0, %v139_v41  ;;  %v136_v46 = vsub.f32 %v110_v44, %v134_v42 }
  0xd0   :  { %v143_v47 = vmul.f32 1.442695, %v141_v45  ;;  %v140_v48 = vand.u32 2147483647, %v136_v46  ;;  %v138_v7 = vmax.f32 %v136_v46, 0.0 }
  0xd2   :  { %237 = vpow2.f32 %v143_v47  ;;  %v142_v49 = vsub.f32 0.0, %v140_v48 }
  0xd4   :  { %v145_v50 = vmul.f32 1.442695, %v142_v49 }
  0xd6   :  { %239 = vpow2.f32 %v145_v50 }
  0xdf   :  { %v238_v51 = vpop.eup %237 }
  0xe0   :  { %v147_v52 = vadd.f32 1.0, %v238_v51  ;;  %v150_v55 = vmul.f32 -0.5, %v238_v51  ;;  %v153_v58 = vand.u32 2147483647, %v238_v51 }
  0xe2   :  { %241 = vlog2.f32 %v147_v52  ;;  %v151_v56 = vadd.f32 1.0, %v150_v55  ;;  %vm154_vm9 = vcmp.lt.f32.partialorder %v153_v58, 0.0004427343 }
  0xe3   :  { %v240_v53 = vpop.eup %239 }
  0xe4   :  { %v156_v54 = vadd.f32 1.0, %v240_v53  ;;  %v159_v57 = vmul.f32 -0.5, %v240_v53  ;;  %v152_v61 = vmul.f32 %v238_v51, %v151_v56  ;;  %v162_v0 = vand.u32 2147483647, %v240_v53 }
  0xe6   :  { %243 = vlog2.f32 %v156_v54  ;;  %v160_v62 = vadd.f32 1.0, %v159_v57  ;;  %vm163_vm10 = vcmp.lt.f32.partialorder %v162_v0, 0.0004427343 }
  0xe8   :  { %v161_v6 = vmul.f32 %v240_v53, %v160_v62 }
  0xef   :  { %v242_v59 = vpop.eup %241 }
  0xf0   :  { %v149_v60 = vmul.f32 0.6931472, %v242_v59 }
  0xf2   :  { %v155_v1 = vsel %vm154_vm9, %v152_v61, %v149_v60 }
  0xf3   :  { %v244_v3 = vpop.eup %243  ;;  %v165_v4 = vadd.f32 %v155_v1, %v137_v63 }
  0xf4   :  { %v158_v5 = vmul.f32 0.6931472, %v244_v3 }
  0xf5   :  { %v181_v8 = vadd.f32 %v179_v2, %v165_v4 }
  0xf6   :  { %v164_v9 = vsel %vm163_vm10, %v161_v6, %v158_v5 }
  0xf7   :  { %v166_v11 = vadd.f32 %v164_v9, %v138_v7  ;;  %184 = vst.msk [vmem:[#allocation2] sm:$0xff] %vm78_vm0, %v181_v8 }
  0xf9   :  { %v182_v12 = vadd.f32 %v180_v10, %v166_v11 }
  0xfb   :  { %185 = vst.msk [vmem:[#allocation2 + $0x8] sm:$0xff] %vm78_vm0, %v182_v12 }
  0xfe   :  { %v189_v13 = vld [vmem:[#allocation2] sm:$0xff] }
  0xff   :  { %v191_v15 = vsel %vm78_vm0, %v189_v13, 0.0 }
 0x102   :  { %v190_v14 = vld [vmem:[#allocation2 + $0x8] sm:$0xff] }
 0x103   :  { %v192_v16 = vsel %vm78_vm0, %v190_v14, 0.0 }
 0x104   :  { %v193_v17 = vadd.f32 %v192_v16, %v191_v15 }
 0x106   :  { %194 = vadd.xlane.f32.xlu0 %v193_v17 }
 0x18f   :  { %v195_v18 = vpop.xlane.xlu0 %194 }
 0x190   :  { %v196_v19 = vrot.slane %v195_v18, 4 }
 0x192   :  { %v197_v20 = vadd.f32 %v196_v19, %v195_v18 }
 0x194   :  { %v198_v21 = vrot.slane %v197_v20, 2 }
 0x196   :  { %v199_v22 = vadd.f32 %v198_v21, %v197_v20 }
 0x198   :  { %v200_v23 = vrot.slane %v199_v22, 1 }
 0x19a   :  { %v201_v24 = vadd.f32 %v200_v23, %v199_v22 }
 0x19c   :  { %220 = vpush %v201_v24 }
 0x1cd   :  { %s221_s0 = spop %220 }
 0x1ce   :  { %204 = sst [smem:[#allocation9]] %s221_s0 }
 0x1cf   :  { %212 = dma.smem_to_hbm %s325_s2, 16, %s367_s3, [#allocation5]  }
 0x1d0   :  { %317 = dma.done.wait [#allocation5], 16  }
 0x1d1   :  { %318 = vsyncadd [#allocation5], 4294967280 }
 0x1d2   :  { %216 = sfence }
 0x1d3   :  { %217 = vsyncpa [#allocation4], 1 }
 0x1d4   :  { %218 = vsyncpa [#allocation7], 1 }
 0x1d5   :  { %219 = vsyncpa [#allocation5], 1 }

</bundles_post_ra>
